<compile_context>
chip_gen: v6e
topology: v6e:2x2x1
jax: 0.10.0
libtpu: 0.0.40
codegen_flags: <defaults>
</compile_context>

<pallas_src>
from functools import partial

import jax
import jax.numpy as jnp
from jax import lax
from jax.experimental import pallas as pl
from jax.experimental.pallas import tpu as pltpu


def _lane_shift(x, direction):
    """Shift x by one lane along the last axis (explicit, unambiguous form).

    direction=+1: out[..., i] = x[..., i + 1]; direction=-1: out[..., i] = x[..., i - 1].
    The wrapped edge lane is never consumed by the caller (parity select).
    """
    if direction == +1:
        return jnp.concatenate([x[:, 1:], x[:, :1]], axis=1)
    return jnp.concatenate([x[:, -1:], x[:, :-1]], axis=1)


def _nll_kernel(p_ref, t_ref, ls_ref, lw_ref, *out_refs,
                eps, tile_n, num_tiles, hw2, want_full, need_stats, mask_tail):
    """One (batch b, lane tile ti) grid step.

    Inputs are (1, M, tile_n) blocks whose lanes interleave the two vector
    components: lane 2k = x, lane 2k+1 = y of spatial position k.  lw has been
    duplicated onto both component lanes in the wrapper, so every per-lane loss
    value is the true loss of that lane's position (duplicated x2); the summed
    loss accumulator is halved in the wrapper, while the num/den statistics
    need no correction (den already contains the factor 2 of the reference).
    """
    ti = pl.program_id(1)

    outs = list(out_refs)
    full_ref = outs.pop(0) if want_full else None
    lsum_ref = None if want_full else outs.pop(0)
    num_ref = outs.pop(0) if need_stats else None
    den_ref = outs.pop(0) if need_stats else None
    has_acc = (lsum_ref is not None) or need_stats

    if has_acc:
        @pl.when(ti == 0)
        def _init():
            if lsum_ref is not None:
                lsum_ref[...] = jnp.zeros_like(lsum_ref)
            if need_stats:
                num_ref[...] = jnp.zeros_like(num_ref)
                den_ref[...] = jnp.zeros_like(den_ref)

    p = p_ref[0].astype(jnp.float32)      # (M, T)
    tg = t_ref[0].astype(jnp.float32)
    ls = ls_ref[0].astype(jnp.float32)
    lw = lw_ref[0].astype(jnp.float32)    # duplicated on both component lanes

    diff = jnp.abs(p - tg)
    inv_std = jnp.minimum(jnp.exp(-ls), 1.0 / eps)
    dw = diff * inv_std
    s = -0.5 * (dw * dw) - ls             # per-component contribution to loss_comp

    # pair-sum over the interleaved (x, y) lanes:
    #   partner[2k] = s[2k+1], partner[2k+1] = s[2k]
    parity = lax.broadcasted_iota(jnp.int32, s.shape, 1) & 1
    partner = jnp.where(parity == 0, _lane_shift(s, +1), _lane_shift(s, -1))
    comp = (s + partner) + lw             # (M, T); each position duplicated on its 2 lanes

    m = jnp.max(comp, axis=0, keepdims=True)                     # (1, T)
    lse = m + jnp.log(jnp.sum(jnp.exp(comp - m), axis=0, keepdims=True))
    loss = -lse                                                  # (1, T)

    if want_full:
        full_ref[...] = loss[None]        # padded lanes sliced off in the wrapper

    if need_stats:
        mixw = jnp.exp(lw)
        num_p = jnp.sum(inv_std * mixw, axis=0, keepdims=True)   # (1, T)
        den_p = jnp.sum(mixw, axis=0, keepdims=True)             # (1, T), includes the x2 dup

    if has_acc:
        def _accum(valid):
            if lsum_ref is not None:
                l = loss if valid is None else jnp.where(valid, loss, 0.0)
                lsum_ref[...] += l[None]
            if need_stats:
                npv = num_p if valid is None else jnp.where(valid, num_p, 0.0)
                dpv = den_p if valid is None else jnp.where(valid, den_p, 0.0)
                num_ref[...] += npv[None]
                den_ref[...] += dpv[None]

        if mask_tail:
            # Only the final lane tile of each batch element can contain
            # out-of-range (stale) lanes -> mask only there.
            @pl.when(ti == num_tiles - 1)
            def _tail():
                lane = lax.broadcasted_iota(jnp.int32, (1, tile_n), 1)
                _accum(ti * tile_n + lane < hw2)

            @pl.when(ti < num_tiles - 1)
            def _body():
                _accum(None)
        else:
            _accum(None)


def _pick_tile(hw2, cap):
    """Choose the lane tile: full-dim if it fits, else a multiple of 128
    (preferring an exact divisor of hw2 to avoid the masked partial tail)."""
    if hw2 <= cap:
        return hw2, 1, False
    if hw2 % 128 == 0:
        q = hw2 // 128
        for d in range(cap // 128, 0, -1):
            if q % d == 0:
                if 2 * d * 128 >= cap:      # exact divisor that is not too small
                    return d * 128, q // d, False
                break
    tile = (cap // 128) * 128
    tile = max(tile, 128)
    num_tiles = -(-hw2 // tile)
    return tile, num_tiles, num_tiles * tile != hw2


@partial(jax.jit, static_argnames=("loss_weight", "adaptive_weight", "momentum",
                                   "eps", "training", "reduction", "max_tile_n"))
def mvd_gaussian_mixture_nll_loss(pred, target, logstd, logmixweight,
                                  mean_inv_std, *, loss_weight=1.0,
                                  adaptive_weight=True, momentum=0.1,
                                  eps=1e-4, training=True, reduction='mean',
                                  max_tile_n=32768):
    """pred/target/logstd: (n, num_mix, h, w, 2); logmixweight: (n, num_mix, h, w).

    Returns (loss, new_mean_inv_std). Only the rois=None / weight=None path is
    supported.
    """
    # TODO(synk): rois / logsumexp_across_rois path not implemented (helper not provided).
    n, M, h, w, two = pred.shape
    assert two == 2
    assert target.shape == pred.shape and logstd.shape == pred.shape
    assert logmixweight.shape == (n, M, h, w)
    assert reduction in ('none', 'mean', 'sum')
    hw2 = h * w * 2
    N = n * h * w
    assert hw2 < 2 ** 31

    # --- transpose-free views of the three big tensors (zero-copy reshapes)
    p3 = pred.reshape(n, M, hw2)
    t3 = target.reshape(n, M, hw2)
    ls3 = logstd.reshape(n, M, hw2)
    # logmixweight is the only tensor that needs a (small) staging pass: it is
    # duplicated onto the interleaved component lanes so its layout matches.
    lw3 = jnp.broadcast_to(logmixweight[..., None],
                           (n, M, h, w, 2)).reshape(n, M, hw2)

    need_stats = bool(adaptive_weight and training)
    want_full = reduction == 'none'

    # --- tile selection: VMEM-budgeted per generation, actual input dtype size
    try:
        vmem_cap = int(pltpu.get_tpu_info().vmem_capacity_bytes)
    except Exception:
        vmem_cap = 64 << 20                 # conservative fallback (v7x-sized)
    vmem_limit = min(int(vmem_cap * 3 // 4), 96 << 20)
    isz = jnp.dtype(pred.dtype).itemsize
    isz_lw = jnp.dtype(logmixweight.dtype).itemsize
    # double-buffered inputs + f32 in-kernel temporaries, per lane of the tile
    per_lane = 2 * M * (3 * isz + isz_lw) + 14 * M * 4
    budget = vmem_limit // 2
    cap = max(128, min(int(max_tile_n), (budget // per_lane) // 128 * 128))
    tile_n, num_tiles, mask_tail = _pick_tile(hw2, cap)

    in_spec = pl.BlockSpec((1, M, tile_n), lambda b, ti: (b, 0, ti))
    acc_shape = jax.ShapeDtypeStruct((n, 1, tile_n), jnp.float32)
    acc_spec = pl.BlockSpec((1, 1, tile_n), lambda b, ti: (b, 0, 0))

    out_shapes, out_specs = [], []
    if want_full:
        out_shapes.append(jax.ShapeDtypeStruct((n, 1, num_tiles * tile_n),
                                               jnp.float32))
        out_specs.append(pl.BlockSpec((1, 1, tile_n), lambda b, ti: (b, 0, ti)))
    else:
        out_shapes.append(acc_shape)
        out_specs.append(acc_spec)
    if need_stats:
        out_shapes += [acc_shape, acc_shape]
        out_specs += [acc_spec, acc_spec]

    kern = partial(_nll_kernel, eps=eps, tile_n=tile_n, num_tiles=num_tiles,
                   hw2=hw2, want_full=want_full, need_stats=need_stats,
                   mask_tail=mask_tail)

    outs = pl.pallas_call(
        kern,
        out_shape=tuple(out_shapes),
        grid=(n, num_tiles),
        in_specs=[in_spec, in_spec, in_spec, in_spec],
        out_specs=tuple(out_specs),
        compiler_params=pltpu.CompilerParams(
            dimension_semantics=("parallel", "arbitrary"),
            vmem_limit_bytes=int(vmem_limit)),
    )(p3, t3, ls3, lw3)

    oi = 0
    loss_elem = None
    loss_sum = None
    if want_full:
        full = outs[oi]; oi += 1
        loss_elem = full[:, 0, :hw2].reshape(n, h, w, 2)[..., 0]
    else:
        lsum = outs[oi]; oi += 1
        loss_sum = 0.5 * jnp.sum(lsum)      # each position was counted on 2 lanes

    new_mean_inv_std = mean_inv_std
    if need_stats:
        num_acc = outs[oi]
        den_acc = outs[oi + 1]
        batch_mis = jnp.sum(num_acc) / jnp.maximum(jnp.sum(den_acc), eps)
        new_mean_inv_std = mean_inv_std * (1.0 - momentum) + momentum * batch_mis

    scale = jnp.float32(loss_weight)
    if adaptive_weight:
        scale = scale / jnp.maximum(new_mean_inv_std, eps)

    if reduction == 'none':
        out = scale * loss_elem
    elif reduction == 'sum':
        out = scale * loss_sum
    else:  # 'mean'
        out = scale * (loss_sum / N)
    return out, new_mean_inv_std


class MVDGaussianMixtureNLLLoss:
    """Minimal stateful wrapper mirroring the PyTorch module (eager use only).

    The running-buffer update is a host-side Python side effect; inside
    jit/scan/pmap, use the functional `mvd_gaussian_mixture_nll_loss` which
    threads `mean_inv_std` explicitly.
    """

    def __init__(self, dim=1, reduction='mean', loss_weight=1.0,
                 adaptive_weight=True, momentum=0.1, eps=1e-4):
        assert dim == 1
        self.reduction = reduction
        self.loss_weight = loss_weight
        self.adaptive_weight = adaptive_weight
        self.momentum = momentum
        self.eps = eps
        self.training = True
        self.mean_inv_std = jnp.float32(1.0)   # register_buffer('mean_inv_std', 1.)

    def __call__(self, pred, target, logstd=None, logmixweight=None,
                 reduction_override=None):
        assert reduction_override in (None, 'none', 'mean', 'sum')
        reduction = reduction_override if reduction_override else self.reduction
        loss, new_mis = mvd_gaussian_mixture_nll_loss(
            pred, target, logstd, logmixweight, self.mean_inv_std,
            loss_weight=self.loss_weight, adaptive_weight=self.adaptive_weight,
            momentum=self.momentum, eps=self.eps, training=self.training,
            reduction=reduction)
        self.mean_inv_std = new_mis
        return loss


def _reference(pred, target, logstd, logmixweight, mean_inv_std, *, eps=1e-4,
               momentum=0.1, training=True, adaptive_weight=True):
    """Pure-JAX reference of the PyTorch forward (rois=None, weight=None).

    Returns per-element loss (n, h, w) and the updated mean_inv_std."""
    diff = jnp.abs(pred - target)
    inv_std = jnp.minimum(jnp.exp(-logstd), 1.0 / eps)
    dwsq = jnp.sum((diff * inv_std) ** 2, axis=-1)
    loss_comp = -0.5 * dwsq + logmixweight - jnp.sum(logstd, axis=-1)
    loss = -jax.scipy.special.logsumexp(loss_comp, axis=1)
    new_mis = mean_inv_std
    if adaptive_weight:
        if training:
            mixw = jnp.exp(logmixweight)[..., None]
            batch = jnp.sum(inv_std * mixw) / jnp.maximum(jnp.sum(mixw) * 2.0, eps)
            new_mis = mean_inv_std * (1.0 - momentum) + momentum * batch
        loss = loss / jnp.maximum(new_mis, eps)
    return loss, new_mis


def _close(a, b, rtol=1e-4, atol=1e-4):
    return jnp.allclose(a, b, rtol=rtol, atol=atol)


if __name__ == "__main__":
    # ---- test 1: module API, reduction='mean' ----
    n, num_mix, h, w = 2, 4, 8, 16      # hw2 = 256
    key = jax.random.PRNGKey(0)
    k1, k2, k3, k4 = jax.random.split(key, 4)
    pred = jax.random.normal(k1, (n, num_mix, h, w, 2), dtype=jnp.float32)
    target = jax.random.normal(k2, (n, num_mix, h, w, 2), dtype=jnp.float32)
    logstd = 0.5 * jax.random.normal(k3, (n, num_mix, h, w, 2), dtype=jnp.float32)
    logmixweight = jax.nn.log_softmax(
        jax.random.normal(k4, (n, num_mix, h, w), dtype=jnp.float32), axis=1)

    module = MVDGaussianMixtureNLLLoss(dim=1, reduction='mean', loss_weight=1.0,
                                       adaptive_weight=True, momentum=0.1, eps=1e-4)
    out1 = jax.block_until_ready(module(pred, target, logstd=logstd,
                                        logmixweight=logmixweight))
    mis1 = jax.block_until_ready(module.mean_inv_std)
    ref1_elem, ref1_mis = _reference(pred, target, logstd, logmixweight,
                                     jnp.float32(1.0))
    assert _close(out1, jnp.mean(ref1_elem)), (out1, jnp.mean(ref1_elem))
    assert _close(mis1, ref1_mis), (mis1, ref1_mis)

    # ---- test 2: odd shapes (num_mix=3, hw2=126 -> full-dim lane tile) ----
    n2, m2, h2, w2 = 2, 3, 7, 9
    kk = jax.random.split(jax.random.PRNGKey(1), 4)
    pred2 = jax.random.normal(kk[0], (n2, m2, h2, w2, 2), dtype=jnp.float32)
    target2 = jax.random.normal(kk[1], (n2, m2, h2, w2, 2), dtype=jnp.float32)
    logstd2 = 0.5 * jax.random.normal(kk[2], (n2, m2, h2, w2, 2), dtype=jnp.float32)
    logw2 = jax.nn.log_softmax(
        jax.random.normal(kk[3], (n2, m2, h2, w2), dtype=jnp.float32), axis=1)

    out2, mis2 = mvd_gaussian_mixture_nll_loss(
        pred2, target2, logstd2, logw2, jnp.float32(1.0))
    out2 = jax.block_until_ready(out2)
    ref2_elem, ref2_mis = _reference(pred2, target2, logstd2, logw2,
                                     jnp.float32(1.0))
    assert _close(out2, jnp.mean(ref2_elem)), (out2, jnp.mean(ref2_elem))
    assert _close(mis2, ref2_mis), (mis2, ref2_mis)

    # ---- test 3: reduction='none' (per-element check) ----
    loss_none, mis3 = mvd_gaussian_mixture_nll_loss(
        pred2, target2, logstd2, logw2, jnp.float32(1.0), reduction='none')
    loss_none = jax.block_until_ready(loss_none)
    assert loss_none.shape == (n2, h2, w2)
    assert _close(loss_none, ref2_elem)
    assert _close(mis3, ref2_mis)

    # ---- test 4: force multi-tile accumulation (tile_n=128, 2 tiles/batch) ----
    out4, mis4 = mvd_gaussian_mixture_nll_loss(
        pred, target, logstd, logmixweight, jnp.float32(1.0), max_tile_n=128)
    out4 = jax.block_until_ready(out4)
    assert _close(out4, jnp.mean(ref1_elem)), (out4, jnp.mean(ref1_elem))
    assert _close(mis4, ref1_mis)

    # ---- test 5: eval mode (stats compiled out), reduction='sum' ----
    out5, mis5 = mvd_gaussian_mixture_nll_loss(
        pred, target, logstd, logmixweight, jnp.float32(0.8),
        training=False, reduction='sum')
    out5 = jax.block_until_ready(out5)
    ref5_elem, ref5_mis = _reference(pred, target, logstd, logmixweight,
                                     jnp.float32(0.8), training=False)
    assert _close(out5, jnp.sum(ref5_elem), rtol=1e-4, atol=1e-3)
    assert _close(mis5, ref5_mis)

    print("KERNEL_OK")
</pallas_src>

<mosaic_0001>
module attributes {stable_mosaic.version = 11 : i64} {
  func.func @_nll_kernel(%arg0: i32, %arg1: i32, %arg2: memref<1x4x256xf32, #tpu.memory_space<vmem>>, %arg3: memref<1x4x256xf32, #tpu.memory_space<vmem>>, %arg4: memref<1x4x256xf32, #tpu.memory_space<vmem>>, %arg5: memref<1x4x256xf32, #tpu.memory_space<vmem>>, %arg6: memref<1x1x256xf32, #tpu.memory_space<vmem>>, %arg7: memref<1x1x256xf32, #tpu.memory_space<vmem>>, %arg8: memref<1x1x256xf32, #tpu.memory_space<vmem>>) attributes {dimension_semantics = [#tpu.dimension_semantics<parallel>, #tpu.dimension_semantics<arbitrary>], iteration_bounds = array<i64: 2, 1>, scalar_prefetch = 0 : i64, scratch_operands = 0 : i64, tpu.core_type = #tpu.core_type<tc>, window_params = [{transform_indices = @transform_0, window_bounds = array<i64: 1, 4, 256>}, {transform_indices = @transform_1, window_bounds = array<i64: 1, 4, 256>}, {transform_indices = @transform_2, window_bounds = array<i64: 1, 4, 256>}, {transform_indices = @transform_3, window_bounds = array<i64: 1, 4, 256>}, {transform_indices = @transform_4, window_bounds = array<i64: 1, 1, 256>}, {transform_indices = @transform_5, window_bounds = array<i64: 1, 1, 256>}, {transform_indices = @transform_6, window_bounds = array<i64: 1, 1, 256>}]} {
    %c0_i32 = arith.constant 0 : i32
    %0 = arith.cmpi eq, %arg1, %c0_i32 : i32
    %1 = arith.extui %0 : i1 to i32
    %c0_i32_0 = arith.constant 0 : i32
    %2 = arith.cmpi ne, %1, %c0_i32_0 : i32
    scf.if %2 {
      %cst_38 = arith.constant 0.000000e+00 : f32
      %66 = vector.broadcast %cst_38 : f32 to vector<1x1x256xf32>
      %c0_39 = arith.constant 0 : index
      %c0_40 = arith.constant 0 : index
      %c0_41 = arith.constant 0 : index
      %67 = vector.load %arg6[%c0_39, %c0_40, %c0_41] : memref<1x1x256xf32, #tpu.memory_space<vmem>>, vector<1x1x256xf32>
      tpu.vector_store %arg6[%c0_39, %c0_40, %c0_41], %66 {strides = array<i32>} : memref<1x1x256xf32, #tpu.memory_space<vmem>>, vector<1x1x256xf32>,
      %cst_42 = arith.constant 0.000000e+00 : f32
      %68 = vector.broadcast %cst_42 : f32 to vector<1x1x256xf32>
      %c0_43 = arith.constant 0 : index
      %c0_44 = arith.constant 0 : index
      %c0_45 = arith.constant 0 : index
      %69 = vector.load %arg7[%c0_43, %c0_44, %c0_45] : memref<1x1x256xf32, #tpu.memory_space<vmem>>, vector<1x1x256xf32>
      tpu.vector_store %arg7[%c0_43, %c0_44, %c0_45], %68 {strides = array<i32>} : memref<1x1x256xf32, #tpu.memory_space<vmem>>, vector<1x1x256xf32>,
      %cst_46 = arith.constant 0.000000e+00 : f32
      %70 = vector.broadcast %cst_46 : f32 to vector<1x1x256xf32>
      %c0_47 = arith.constant 0 : index
      %c0_48 = arith.constant 0 : index
      %c0_49 = arith.constant 0 : index
      %71 = vector.load %arg8[%c0_47, %c0_48, %c0_49] : memref<1x1x256xf32, #tpu.memory_space<vmem>>, vector<1x1x256xf32>
      tpu.vector_store %arg8[%c0_47, %c0_48, %c0_49], %70 {strides = array<i32>} : memref<1x1x256xf32, #tpu.memory_space<vmem>>, vector<1x1x256xf32>,
    } else {
    }
    %c0 = arith.constant 0 : index
    %c0_1 = arith.constant 0 : index
    %c0_2 = arith.constant 0 : index
    %3 = vector.load %arg2[%c0, %c0_1, %c0_2] : memref<1x4x256xf32, #tpu.memory_space<vmem>>, vector<1x4x256xf32>
    %4 = vector.shape_cast %3 : vector<1x4x256xf32> to vector<4x256xf32>
    %c0_3 = arith.constant 0 : index
    %c0_4 = arith.constant 0 : index
    %c0_5 = arith.constant 0 : index
    %5 = vector.load %arg3[%c0_3, %c0_4, %c0_5] : memref<1x4x256xf32, #tpu.memory_space<vmem>>, vector<1x4x256xf32>
    %6 = vector.shape_cast %5 : vector<1x4x256xf32> to vector<4x256xf32>
    %c0_6 = arith.constant 0 : index
    %c0_7 = arith.constant 0 : index
    %c0_8 = arith.constant 0 : index
    %7 = vector.load %arg4[%c0_6, %c0_7, %c0_8] : memref<1x4x256xf32, #tpu.memory_space<vmem>>, vector<1x4x256xf32>
    %8 = vector.shape_cast %7 : vector<1x4x256xf32> to vector<4x256xf32>
    %c0_9 = arith.constant 0 : index
    %c0_10 = arith.constant 0 : index
    %c0_11 = arith.constant 0 : index
    %9 = vector.load %arg5[%c0_9, %c0_10, %c0_11] : memref<1x4x256xf32, #tpu.memory_space<vmem>>, vector<1x4x256xf32>
    %10 = vector.shape_cast %9 : vector<1x4x256xf32> to vector<4x256xf32>
    %11 = arith.subf %4, %6 : vector<4x256xf32>
    %12 = math.absf %11 : vector<4x256xf32>
    %cst = arith.constant 0.000000e+00 : f32
    %13 = vector.broadcast %cst : f32 to vector<4x256xf32>
    %14 = arith.subf %13, %8 : vector<4x256xf32>
    %15 = math.exp %14 : vector<4x256xf32>
    %cst_12 = arith.constant 1.000000e+04 : f32
    %16 = vector.broadcast %cst_12 : f32 to vector<4x256xf32>
    %17 = arith.minimumf %15, %16 : vector<4x256xf32>
    %18 = arith.mulf %12, %17 : vector<4x256xf32>
    %19 = arith.mulf %18, %18 : vector<4x256xf32>
    %cst_13 = arith.constant -5.000000e-01 : f32
    %20 = vector.broadcast %cst_13 : f32 to vector<4x256xf32>
    %21 = arith.mulf %20, %19 : vector<4x256xf32>
    %22 = arith.subf %21, %8 : vector<4x256xf32>
    %23 = tpu.iota {dimensions = array<i32: 1>} : vector<4x256xi32>
    %c1_i32 = arith.constant 1 : i32
    %24 = vector.broadcast %c1_i32 : i32 to vector<4x256xi32>
    %25 = arith.andi %23, %24 : vector<4x256xi32>
    %c0_i32_14 = arith.constant 0 : i32
    %26 = vector.broadcast %c0_i32_14 : i32 to vector<4x256xi32>
    %27 = arith.cmpi eq, %25, %26 : vector<4x256xi32>
    %28 = vector.extract_strided_slice %22 {offsets = [0, 1], sizes = [4, 255], strides = [1, 1]} : vector<4x256xf32> to vector<4x255xf32>
    %29 = vector.extract_strided_slice %22 {offsets = [0, 0], sizes = [4, 1], strides = [1, 1]} : vector<4x256xf32> to vector<4x1xf32>
    %30 = tpu.concatenate %28, %29 in 1 : vector<4x255xf32>, vector<4x1xf32> -> vector<4x256xf32>
    %31 = vector.extract_strided_slice %22 {offsets = [0, 255], sizes = [4, 1], strides = [1, 1]} : vector<4x256xf32> to vector<4x1xf32>
    %32 = vector.extract_strided_slice %22 {offsets = [0, 0], sizes = [4, 255], strides = [1, 1]} : vector<4x256xf32> to vector<4x255xf32>
    %33 = tpu.concatenate %31, %32 in 1 : vector<4x1xf32>, vector<4x255xf32> -> vector<4x256xf32>
    %34 = arith.select %27, %30, %33 : vector<4x256xi1>, vector<4x256xf32>
    %35 = arith.addf %22, %34 : vector<4x256xf32>
    %36 = arith.addf %35, %10 : vector<4x256xf32>
    %cst_15 = arith.constant dense<0xFF800000> : vector<256xf32>
    %37 = vector.multi_reduction <maximumf>, %36, %cst_15 [0] : vector<4x256xf32> to vector<256xf32>
    %38 = vector.shape_cast %37 : vector<256xf32> to vector<1x256xf32>
    %39 = vector.broadcast %38 : vector<1x256xf32> to vector<4x256xf32>
    %40 = arith.subf %36, %39 : vector<4x256xf32>
    %41 = math.exp %40 : vector<4x256xf32>
    %cst_16 = arith.constant dense<0.000000e+00> : vector<256xf32>
    %42 = vector.multi_reduction <add>, %41, %cst_16 [0] : vector<4x256xf32> to vector<256xf32>
    %43 = vector.shape_cast %42 : vector<256xf32> to vector<1x256xf32>
    %44 = math.log %43 : vector<1x256xf32>
    %45 = arith.addf %38, %44 : vector<1x256xf32>
    %cst_17 = arith.constant 0.000000e+00 : f32
    %46 = vector.broadcast %cst_17 : f32 to vector<1x256xf32>
    %47 = arith.subf %46, %45 : vector<1x256xf32>
    %48 = math.exp %10 : vector<4x256xf32>
    %49 = arith.mulf %17, %48 : vector<4x256xf32>
    %cst_18 = arith.constant dense<0.000000e+00> : vector<256xf32>
    %50 = vector.multi_reduction <add>, %49, %cst_18 [0] : vector<4x256xf32> to vector<256xf32>
    %51 = vector.shape_cast %50 : vector<256xf32> to vector<1x256xf32>
    %cst_19 = arith.constant dense<0.000000e+00> : vector<256xf32>
    %52 = vector.multi_reduction <add>, %48, %cst_19 [0] : vector<4x256xf32> to vector<256xf32>
    %53 = vector.shape_cast %52 : vector<256xf32> to vector<1x256xf32>
    %c0_20 = arith.constant 0 : index
    %c0_21 = arith.constant 0 : index
    %c0_22 = arith.constant 0 : index
    %54 = vector.load %arg6[%c0_20, %c0_21, %c0_22] : memref<1x1x256xf32, #tpu.memory_space<vmem>>, vector<1x1x256xf32>
    %55 = vector.shape_cast %47 : vector<1x256xf32> to vector<1x1x256xf32>
    %56 = arith.addf %54, %55 : vector<1x1x256xf32>
    %c0_23 = arith.constant 0 : index
    %c0_24 = arith.constant 0 : index
    %c0_25 = arith.constant 0 : index
    %57 = vector.load %arg6[%c0_23, %c0_24, %c0_25] : memref<1x1x256xf32, #tpu.memory_space<vmem>>, vector<1x1x256xf32>
    tpu.vector_store %arg6[%c0_23, %c0_24, %c0_25], %56 {strides = array<i32>} : memref<1x1x256xf32, #tpu.memory_space<vmem>>, vector<1x1x256xf32>,
    %c0_26 = arith.constant 0 : index
    %c0_27 = arith.constant 0 : index
    %c0_28 = arith.constant 0 : index
    %58 = vector.load %arg7[%c0_26, %c0_27, %c0_28] : memref<1x1x256xf32, #tpu.memory_space<vmem>>, vector<1x1x256xf32>
    %59 = vector.shape_cast %51 : vector<1x256xf32> to vector<1x1x256xf32>
    %60 = arith.addf %58, %59 : vector<1x1x256xf32>
    %c0_29 = arith.constant 0 : index
    %c0_30 = arith.constant 0 : index
    %c0_31 = arith.constant 0 : index
    %61 = vector.load %arg7[%c0_29, %c0_30, %c0_31] : memref<1x1x256xf32, #tpu.memory_space<vmem>>, vector<1x1x256xf32>
    tpu.vector_store %arg7[%c0_29, %c0_30, %c0_31], %60 {strides = array<i32>} : memref<1x1x256xf32, #tpu.memory_space<vmem>>, vector<1x1x256xf32>,
    %c0_32 = arith.constant 0 : index
    %c0_33 = arith.constant 0 : index
    %c0_34 = arith.constant 0 : index
    %62 = vector.load %arg8[%c0_32, %c0_33, %c0_34] : memref<1x1x256xf32, #tpu.memory_space<vmem>>, vector<1x1x256xf32>
    %63 = vector.shape_cast %53 : vector<1x256xf32> to vector<1x1x256xf32>
    %64 = arith.addf %62, %63 : vector<1x1x256xf32>
    %c0_35 = arith.constant 0 : index
    %c0_36 = arith.constant 0 : index
    %c0_37 = arith.constant 0 : index
    %65 = vector.load %arg8[%c0_35, %c0_36, %c0_37] : memref<1x1x256xf32, #tpu.memory_space<vmem>>, vector<1x1x256xf32>
    tpu.vector_store %arg8[%c0_35, %c0_36, %c0_37], %64 {strides = array<i32>} : memref<1x1x256xf32, #tpu.memory_space<vmem>>, vector<1x1x256xf32>,
    return
  }
  func.func @transform_0(%arg0: i32, %arg1: i32) -> (i32, i32, i32) {
    %c0_i32 = arith.constant 0 : i32
    %c0_i32_0 = arith.constant 0 : i32
    return %arg0, %c0_i32, %arg1 : i32, i32, i32
  }
  func.func @transform_1(%arg0: i32, %arg1: i32) -> (i32, i32, i32) {
    %c0_i32 = arith.constant 0 : i32
    %c0_i32_0 = arith.constant 0 : i32
    return %arg0, %c0_i32, %arg1 : i32, i32, i32
  }
  func.func @transform_2(%arg0: i32, %arg1: i32) -> (i32, i32, i32) {
    %c0_i32 = arith.constant 0 : i32
    %c0_i32_0 = arith.constant 0 : i32
    return %arg0, %c0_i32, %arg1 : i32, i32, i32
  }
  func.func @transform_3(%arg0: i32, %arg1: i32) -> (i32, i32, i32) {
    %c0_i32 = arith.constant 0 : i32
    %c0_i32_0 = arith.constant 0 : i32
    return %arg0, %c0_i32, %arg1 : i32, i32, i32
  }
  func.func @transform_4(%arg0: i32, %arg1: i32) -> (i32, i32, i32) {
    %c0_i32 = arith.constant 0 : i32
    %c0_i32_0 = arith.constant 0 : i32
    %c0_i32_1 = arith.constant 0 : i32
    return %arg0, %c0_i32, %c0_i32_0 : i32, i32, i32
  }
  func.func @transform_5(%arg0: i32, %arg1: i32) -> (i32, i32, i32) {
    %c0_i32 = arith.constant 0 : i32
    %c0_i32_0 = arith.constant 0 : i32
    %c0_i32_1 = arith.constant 0 : i32
    return %arg0, %c0_i32, %c0_i32_0 : i32, i32, i32
  }
  func.func @transform_6(%arg0: i32, %arg1: i32) -> (i32, i32, i32) {
    %c0_i32 = arith.constant 0 : i32
    %c0_i32_0 = arith.constant 0 : i32
    %c0_i32_1 = arith.constant 0 : i32
    return %arg0, %c0_i32, %c0_i32_0 : i32, i32, i32
  }
}

</mosaic_0001>

<bundles_post_ra>
// kernel: mvd_gaussian_mixture_nll_loss.1
= control target key start
LH: loop header
LB: loop body
LE: loop exit
PB: predicated region body
PF: predicated region fallthrough
CT: control target
= control target key end

     0   :  { %s929_s21 = smov 0   ;;  %s931_s22 = smov 0   ;;  %s1038_s0 = inlined_call_operand.vmem [shape: f32[2,4,256], index: 0, kind: input, shape index: {}]   ;;  %s1039_s1 = inlined_call_operand.vmem [shape: f32[2,4,256], index: 1, kind: input, shape index: {}]   ;;  %s1040_s2 = inlined_call_operand.vmem [shape: f32[2,4,256], index: 2, kind: input, shape index: {}]   ;;  %s1041_s3 = inlined_call_operand.vmem [shape: f32[2,4,256], index: 3, kind: input, shape index: {}]   ;;  %s1042_s4 = inlined_call_operand.vmem [shape: f32[2,1,256], index: 4, kind: output, shape index: {0}]   ;;  %s1043_s5 = inlined_call_operand.vmem [shape: f32[2,1,256], index: 5, kind: output, shape index: {1}]   ;;  %s1044_s6 = inlined_call_operand.vmem [shape: f32[2,1,256], index: 6, kind: output, shape index: {2}]  }
   0x1   :  { %s933_s23 = smov 0  }
   0x2 LB: > { %s29_s24 = sadd.s32 1, %s884_s22  ;;  %p810_p0 = scmp.ge.s32.totalorder %s888_s23, 1  ;;  %s888_s23 = sphi %s933_s23, %s17_s23   ;;  %s884_s22 = sphi %s931_s22, %s1048_s22   ;;  %s880_s21 = sphi %s929_s21, %s1047_s21  }
   0x3   : > { %p31_p1 = scmp.ge.s32.totalorder %s29_s24, 2  ;;  %p287_p2 = scmp.lt.s32.totalorder %s888_s23, 3 }
   0x5   : > { %s1050_s24 = smov (%p31_p1, %s29_s24), 0  ;;  %p288_p3 = pnand %p810_p0, %p287_p2 }
   0x6   : > { %p356_p4 = scmp.lt.s32.totalorder (!%p288_p3), %s880_s21, 1 }
   0x7   : > { %291 = sbr.rel (%p288_p3) target bundleno = 252 (0xfc), region = 36 }
   0xc   : > { %s1052_s21 = smov (!%p356_p4, %s880_s21), 1  ;;  %v411_v8 = vlaneseq  ;;  %v890_v12 = vmov 0.0   ;;  %vm472_vm1 = vcmask 1043456   ;;  %v893_v31 = vmov 1966171168  }
   0xd   : > { %s824_s25 = sshll.u32 %s1052_s21, 3  ;;  %s819_s11 = sshll.u32 %s1052_s21, 1  ;;  %v561_v32 = vunpack.c.l.s4 %v893_v31  ;;  %vm445_vm2 = vcmask 1039360   ;;  %vm456_vm3 = vcmask 7168  }
   0xe   : > { %s383_s28 = scalar_lea.vmem %s1040_s2, %s824_s25  ;;  %s363_s7 = scalar_lea.vmem %s1038_s0, %s824_s25  ;;  %vm975_vm0 = vcmp.lt.s32.totalorder %v411_v8, 256  ;;  %v564_v42 = vshrl.u32 %v411_v8, 7 }
   0xf   : > { %v420_v0 = vld [vmem:[%s383_s28] sm:$0xff]  ;;  %s373_s10 = scalar_lea.vmem %s1039_s1, %s824_s25  ;;  %s959_s14 = scalar_lea.vmem %s1042_s4, %s819_s11  ;;  %v562_v41 = vunpack.c.0.s8 %v561_v32 }
  0x10   : > { %v424_v1 = vsub.f32 0.0, %v420_v0  ;;  %v418_v3 = vld [vmem:[%s363_s7] sm:$0xff]  ;;  %s964_s17 = scalar_lea.vmem %s1043_s5, %s819_s11  ;;  %s969_s20 = scalar_lea.vmem %s1044_s6, %s819_s11  ;;  %415 = vst.msk [vmem:[%s959_s14] sm:$0x3] %vm975_vm0, %v890_v12 }
  0x11   : > { %v419_v4 = vld [vmem:[%s373_s10] sm:$0xff]  ;;  %s393_s27 = scalar_lea.vmem %s1041_s3, %s824_s25  ;;  %416 = vst.msk [vmem:[%s964_s17] sm:$0x3] %vm975_vm0, %v890_v12  ;;  %417 = vst.msk [vmem:[%s969_s20] sm:$0x3] %vm975_vm0, %v890_v12  ;;  %s891_s25 = smov 127   ;;  %v1002_v54 = vsub.s32 %v562_v41, %v564_v42 }
  0x12   : > { %v425_v2 = vmul.f32 1.442695, %v424_v1  ;;  %v422_v5 = vsub.f32 %v418_v3, %v419_v4  ;;  %v988_v13 = vld [vmem:[%s393_s27] sm:$0xff]  ;;  %s892_s28 = smov 1  }
  0x13   : > { %v519_v14 = vmul.f32 1.442695, %v988_v13 }
  0x14   : > { %856 = vpow2.f32 %v425_v2  ;;  %v423_v6 = vand.u32 2147483647, %v422_v5  ;;  %v433_v2 = vand.u32 127, %v411_v8 }
  0x15   : > { %858 = vpow2.f32 %v519_v14 }
  0x16   : > { %v434_v3 = vadd.s32 128, %v433_v2  ;;  %v435_v5 = vand.u32 1, %v433_v2 }
  0x18   : > { %v602_v59 = vld [vmem:[%s969_s20] sm:$0x3]  ;;  %vm437_vm4 = vcmp.eq.s32.totalorder %v435_v5, 0 }
  0x19   : > { %v581_v62 = vld [vmem:[%s964_s17] sm:$0x3] }
  0x21   : > { %v857_v7 = vpop.eup %856 }
  0x22   : > { %v427_v9 = vmin.f32 %v857_v7, 10000.0  ;;  %v859_v19 = vpop.eup %858 }
  0x23   : > { %v540_v21 = vcombine.high %v859_v19, %v859_v19  ;;  %v542_v22 = vsel %vm472_vm1, %v859_v19, 0.0 }
  0x24   : > { %v428_v11 = vmul.f32 %v427_v9, %v423_v6  ;;  %v521_v20 = vmul.f32 %v859_v19, %v427_v9  ;;  %v543_v23 = vrot.slane %v542_v22, 4  ;;  %v436_v6 = vand.u32 1, %v434_v3 }
  0x25   : > { %v549_v26 = vsel %vm472_vm1, %v540_v21, 0.0 }
  0x26   : > { %v429_v15 = vmul.f32 %v428_v11, %v428_v11  ;;  %v523_v24 = vcombine.high %v521_v20, %v521_v20  ;;  %v525_v25 = vsel %vm472_vm1, %v521_v20, 0.0  ;;  %v544_v28 = vadd.f32 %v543_v23, %v542_v22 }
  0x27   : > { %v526_v27 = vrot.slane %v525_v25, 4  ;;  %v550_v29 = vrot.slane %v549_v26, 4  ;;  %vm438_vm5 = vcmp.eq.s32.totalorder %v436_v6, 0 }
  0x28   : > { %v430_v16 = vmul.f32 -0.5, %v429_v15  ;;  %v532_v30 = vsel %vm472_vm1, %v523_v24, 0.0  ;;  %v545_v35 = vrot.slane %v544_v28, 2 }
  0x29   : > { %v527_v33 = vadd.f32 %v526_v27, %v525_v25  ;;  %v533_v34 = vrot.slane %v532_v30, 4  ;;  %v551_v36 = vadd.f32 %v550_v29, %v549_v26 }
  0x2a   : > { %v991_v17 = vsub.f32 %v430_v16, %v420_v0  ;;  %v546_v39 = vadd.f32 %v545_v35, %v544_v28 }
  0x2b   : > { %v528_v37 = vrot.slane %v527_v33, 2  ;;  %v534_v38 = vadd.f32 %v533_v34, %v532_v30  ;;  %v552_v40 = vrot.slane %v551_v36, 2 }
  0x2c   : > { %441 = vrot.lane.b32.xlu0 %v991_v17, %s891_s25  ;;  %v440_v18 = vcombine.high %v991_v17, %v991_v17  ;;  %v547_v45 = vrot.slane %v546_v39, 1 }
  0x2d   : > { %v529_v43 = vadd.f32 %v528_v37, %v527_v33  ;;  %v535_v44 = vrot.slane %v534_v38, 2  ;;  %v553_v46 = vadd.f32 %v552_v40, %v551_v36 }
  0x2e   : > { %451 = vrot.lane.b32.xlu1 %v440_v18, %s892_s28  ;;  %v548_v49 = vadd.f32 %v547_v45, %v546_v39 }
  0x2f   : > { %v530_v47 = vrot.slane %v529_v43, 1  ;;  %v536_v48 = vadd.f32 %v535_v44, %v534_v38  ;;  %v554_v50 = vrot.slane %v553_v46, 1 }
  0x30   : > { %443 = vrot.lane.b32.xlu0 %v440_v18, %s891_s25 }
  0x31   : > { %v531_v51 = vadd.f32 %v530_v47, %v529_v43  ;;  %v537_v52 = vrot.slane %v536_v48, 1  ;;  %v555_v53 = vadd.f32 %v554_v50, %v553_v46 }
  0x32   : > { %454 = vrot.lane.b32.xlu1 %v991_v17, %s892_s28 }
  0x33   : > { %v538_v55 = vadd.f32 %v537_v52, %v536_v48  ;;  %v605_v56 = vcombine.low %v548_v49, %v555_v53 }
  0x35   : > { %v584_v57 = vcombine.low %v531_v51, %v538_v55  ;;  %v612_v58 = vrot.slane %v605_v56, %v1002_v54 }
  0x37   : > { %v591_v60 = vrot.slane %v584_v57, %v1002_v54  ;;  %v619_v61 = vrot.slane %v612_v58, %v1002_v54 }
  0x39   : > { %v598_v63 = vrot.slane %v591_v60, %v1002_v54  ;;  %v621_v0 = vadd.f32 %v619_v61, %v602_v59 }
  0x3b   : > { %v600_v1 = vadd.f32 %v598_v63, %v581_v62  ;;  %622 = vst.msk [vmem:[%s969_s20] sm:$0x3] %vm975_vm0, %v621_v0 }
  0x3d   : > { %601 = vst.msk [vmem:[%s964_s17] sm:$0x3] %vm975_vm0, %v600_v1  ;;  %v556_v1 = vld [vmem:[%s959_s14] sm:$0x3] }
  0x9e   : > { %v442_v4 = vpop.permute.xlu0 %441 }
  0xa0   : > { %v452_v7 = vpop.permute.xlu1 %451 }
  0xa2   : > { %v444_v9 = vpop.permute.xlu0 %443 }
  0xa3   : > { %v446_v12 = vsel %vm445_vm2, %v442_v4, %v444_v9  ;;  %v450_v14 = vsel %vm445_vm2, %v444_v9, %v442_v4 }
  0xa4   : > { %v455_v11 = vpop.permute.xlu1 %454 }
  0xa5   : > { %v457_v15 = vsel %vm456_vm3, %v455_v11, %v452_v7  ;;  %v460_v16 = vsel %vm456_vm3, %v452_v7, %v455_v11 }
  0xa6   : > { %v461_v18 = vsel %vm437_vm4, %v446_v12, %v460_v16  ;;  %v462_v19 = vsel %vm438_vm5, %v450_v14, %v457_v15 }
  0xa7   : > { %v465_v20 = vcombine.low %v461_v18, %v462_v19 }
  0xa9   : > { %v467_v8 = vadd.f32 %v465_v20, %v991_v17 }
  0xab   : > { %v468_v21 = vadd.f32 %v467_v8, %v988_v13 }
  0xad   : > { %v470_v22 = vcombine.high %v468_v21, %v468_v21  ;;  %v473_v23 = vsel %vm472_vm1, %v468_v21, -inf }
  0xae   : > { %v474_v24 = vrot.slane %v473_v23, 4 }
  0xaf   : > { %v480_v25 = vsel %vm472_vm1, %v470_v22, -inf }
  0xb0   : > { %v475_v26 = vmax.f32 %v473_v23, %v474_v24  ;;  %v481_v27 = vrot.slane %v480_v25, 4 }
  0xb2   : > { %v476_v28 = vrot.slane %v475_v26, 2  ;;  %v482_v29 = vmax.f32 %v480_v25, %v481_v27 }
  0xb4   : > { %v477_v30 = vmax.f32 %v475_v26, %v476_v28  ;;  %v483_v31 = vrot.slane %v482_v29, 2 }
  0xb6   : > { %v478_v32 = vrot.slane %v477_v30, 1  ;;  %v484_v33 = vmax.f32 %v482_v29, %v483_v31 }
  0xb8   : > { %v485_v34 = vrot.slane %v484_v33, 1  ;;  %v479_v35 = vmax.f32 %v477_v30, %v478_v32 }
  0xba   : > { %v486_v36 = vmax.f32 %v484_v33, %v485_v34 }
  0xbc   : > { %v489_v17 = vcombine.low %v479_v35, %v486_v36 }
  0xbe   : > { %v491_v37 = vsub.f32 %v468_v21, %v489_v17 }
  0xc0   : > { %v492_v13 = vmul.f32 1.442695, %v491_v37 }
  0xc2   : > { %860 = vpow2.f32 %v492_v13 }
  0xcf   : > { %v861_v38 = vpop.eup %860 }
  0xd0   : > { %v495_v39 = vcombine.high %v861_v38, %v861_v38  ;;  %v497_v40 = vsel %vm472_vm1, %v861_v38, 0.0 }
  0xd1   : > { %v498_v41 = vrot.slane %v497_v40, 4 }
  0xd2   : > { %v504_v42 = vsel %vm472_vm1, %v495_v39, 0.0 }
  0xd3   : > { %v499_v43 = vadd.f32 %v498_v41, %v497_v40  ;;  %v505_v44 = vrot.slane %v504_v42, 4 }
  0xd5   : > { %v500_v45 = vrot.slane %v499_v43, 2  ;;  %v506_v46 = vadd.f32 %v505_v44, %v504_v42 }
  0xd7   : > { %v501_v47 = vadd.f32 %v500_v45, %v499_v43  ;;  %v507_v48 = vrot.slane %v506_v46, 2 }
  0xd9   : > { %v502_v49 = vrot.slane %v501_v47, 1  ;;  %v508_v50 = vadd.f32 %v507_v48, %v506_v46 }
  0xdb   : > { %v503_v51 = vadd.f32 %v502_v49, %v501_v47  ;;  %v509_v52 = vrot.slane %v508_v50, 1 }
  0xdd   : > { %v510_v53 = vadd.f32 %v509_v52, %v508_v50  ;;  %862 = vlog2.f32 %v503_v51 }
  0xdf   : > { %864 = vlog2.f32 %v510_v53 }
  0xea   : > { %v863_v55 = vpop.eup %862 }
  0xeb   : > { %v512_v56 = vmul.f32 0.6931472, %v863_v55 }
  0xec   : > { %v865_v57 = vpop.eup %864 }
  0xed   : > { %v514_v58 = vmul.f32 0.6931472, %v865_v57  ;;  %v515_v59 = vadd.f32 %v512_v56, %v479_v35 }
  0xef   : > { %v516_v60 = vadd.f32 %v514_v58, %v486_v36  ;;  %v517_v61 = vsub.f32 0.0, %v515_v59 }
  0xf1   : > { %v518_v62 = vsub.f32 0.0, %v516_v60 }
  0xf3   : > { %v559_v63 = vcombine.low %v517_v61, %v518_v62 }
  0xf5   : > { %v566_v0 = vrot.slane %v559_v63, %v1002_v54 }
  0xf7   : > { %v573_v2 = vrot.slane %v566_v0, %v1002_v54 }
  0xf9   : > { %v575_v3 = vadd.f32 %v573_v2, %v556_v1 }
  0xfb   : > { %580 = vst.msk [vmem:[%s959_s14] sm:$0x3] %vm975_vm0, %v575_v3 }
  0xfc PF: > { %s17_s23 = sadd.s32 1, %s888_s23   ;;  %s1047_s21 = smov %s884_s22 }
  0xfd   : > { %p14_p5 = scmp.ge.s32.totalorder %s17_s23, 4   ;;  %s1048_s22 = smov %s1050_s24 }
  0xff   :  { %16 = sbr.rel (!%p14_p5) target bundleno = 2 (0x2), region = 103 }

</bundles_post_ra>
